<compile_context>
chip_gen: v7x
topology: tpu7x:2x2x1
jax: 0.10.0
libtpu: 0.0.40
codegen_flags: <defaults>
</compile_context>

<pallas_src>
import jax
import jax.numpy as jnp
from jax.experimental import pallas as pl
from jax.experimental.pallas import tpu as pltpu


def _palayer_kernel(x_ref, w1_ref, b1_ref, w2_ref, b2_ref, out_ref):
    # x_ref  : (1, C, TS)   spatial tile of one image (NCHW with H*W flattened)
    # w1_ref : (Cr, C)      conv1 1x1 weight (Cr = C // 8)
    # b1_ref : (Cr, 1)      conv1 bias
    # w2_ref : (1, Cr)      conv2 1x1 weight
    # b2_ref : (1, 1)       conv2 bias
    # out_ref: (1, C, TS)
    x = x_ref[0].astype(jnp.float32)                              # (C, TS)

    # conv1 (1x1, C -> C/8) + ReLU: weight-stationary matmul, lanes = spatial.
    h = jnp.dot(w1_ref[...].astype(jnp.float32), x,
                preferred_element_type=jnp.float32)
    h = jnp.maximum(h + b1_ref[...].astype(jnp.float32), 0.0)     # (Cr, TS)

    # conv2 (1x1, C/8 -> 1) + Sigmoid.
    y = jnp.dot(w2_ref[...].astype(jnp.float32), h,
                preferred_element_type=jnp.float32)
    y = jax.nn.sigmoid(y + b2_ref[...].astype(jnp.float32))       # (1, TS)

    # Pixel attention: gate every channel of x by the per-pixel scalar y.
    out_ref[0] = (x * y).astype(out_ref.dtype)


def palayer(x_nchw, params, *, tile_spatial=None):
    """PALayer forward. x_nchw: (N, C, H, W). params = (w1, b1, w2, b2)."""
    w1, b1, w2, b2 = params
    N, C, H, W = x_nchw.shape
    Cr = w1.shape[0]
    HW = H * W

    # Pick a lane-dense spatial tile: a multiple of 128 that divides HW.
    # Fall back to the whole image if HW is small / awkward.
    ts = tile_spatial
    if ts is None:
        ts = min(HW, 2048)
        ts = (ts // 128) * 128 if HW >= 128 else HW
    if ts <= 0 or HW % ts != 0 or (ts % 128 != 0 and ts != HW):
        ts = HW

    x2 = x_nchw.reshape(N, C, HW)          # free: contiguous in HBM, no copy
    b1_2 = b1.reshape(Cr, 1)
    w2_2 = w2.reshape(1, Cr)
    b2_2 = b2.reshape(1, 1)

    const = lambda shape: pl.BlockSpec(shape, lambda n, s: (0,) * len(shape))

    out = pl.pallas_call(
        _palayer_kernel,
        out_shape=jax.ShapeDtypeStruct((N, C, HW), x_nchw.dtype),
        grid_spec=pltpu.PrefetchScalarGridSpec(
            num_scalar_prefetch=0,
            grid=(N, HW // ts),
            in_specs=[
                pl.BlockSpec((1, C, ts), lambda n, s: (n, 0, s)),   # x tile
                const((Cr, C)),    # conv1 weight
                const((Cr, 1)),    # conv1 bias
                const((1, Cr)),    # conv2 weight
                const((1, 1)),     # conv2 bias
            ],
            out_specs=pl.BlockSpec((1, C, ts), lambda n, s: (n, 0, s)),
        ),
        compiler_params=pltpu.CompilerParams(
            dimension_semantics=("parallel", "parallel")),
    )(x2, w1, b1_2, w2_2, b2_2)
    return out.reshape(N, C, H, W)


# ---------------- pure-JAX reference (for verification) ----------------
def palayer_reference(x, params):
    w1, b1, w2, b2 = params
    y = jnp.einsum('rc,nchw->nrhw', w1, x) + b1[None, :, None, None]
    y = jnp.maximum(y, 0.0)
    y = jnp.einsum('or,nrhw->nohw', w2, y) + b2[None, :, None, None]
    y = jax.nn.sigmoid(y)
    return x * y


def init_params(key, channel):
    cr = channel // 8
    k1, k2, k3, k4 = jax.random.split(key, 4)
    w1 = 0.2 * jax.random.normal(k1, (cr, channel), jnp.float32)
    b1 = 0.1 * jax.random.normal(k2, (cr,), jnp.float32)
    w2 = 0.2 * jax.random.normal(k3, (1, cr), jnp.float32)
    b2 = 0.1 * jax.random.normal(k4, (1,), jnp.float32)
    return (w1, b1, w2, b2)


if __name__ == "__main__":
    key = jax.random.PRNGKey(0)
    k_x, k_p = jax.random.split(key)

    N, C, H, W = 2, 32, 16, 16            # channel // 8 == 4
    x = jax.random.normal(k_x, (N, C, H, W), jnp.float32)
    params = init_params(k_p, C)

    # tile_spatial=128 -> grid (2, 2): exercises the spatial tiling path.
    run = jax.jit(lambda a, p: palayer(a, p, tile_spatial=128))
    out = jax.block_until_ready(run(x, params))

    ref = palayer_reference(x, params)
    assert out.shape == (N, C, H, W)
    err = jnp.max(jnp.abs(out - ref))
    assert jnp.allclose(out, ref, atol=1e-4, rtol=1e-4), f"max err {err}"

    print("KERNEL_OK")
</pallas_src>

<mosaic_0001>
module attributes {stable_mosaic.version = 11 : i64} {
  func.func @_palayer_kernel(%arg0: i32, %arg1: i32, %arg2: memref<1x32x128xf32, #tpu.memory_space<vmem>>, %arg3: memref<4x32xf32, #tpu.memory_space<vmem>>, %arg4: memref<4x1xf32, #tpu.memory_space<vmem>>, %arg5: memref<1x4xf32, #tpu.memory_space<vmem>>, %arg6: memref<1x1xf32, #tpu.memory_space<vmem>>, %arg7: memref<1x32x128xf32, #tpu.memory_space<vmem>>) attributes {dimension_semantics = [#tpu.dimension_semantics<parallel>, #tpu.dimension_semantics<parallel>], iteration_bounds = array<i64: 2, 2>, scalar_prefetch = 0 : i64, scratch_operands = 0 : i64, tpu.core_type = #tpu.core_type<tc>, window_params = [{transform_indices = @transform_0, window_bounds = array<i64: 1, 32, 128>}, {pipeline_mode = #tpu.pipeline_mode<synchronous>, transform_indices = @transform_1, window_bounds = array<i64: 4, 32>}, {pipeline_mode = #tpu.pipeline_mode<synchronous>, transform_indices = @transform_2, window_bounds = array<i64: 4, 1>}, {pipeline_mode = #tpu.pipeline_mode<synchronous>, transform_indices = @transform_3, window_bounds = array<i64: 1, 4>}, {pipeline_mode = #tpu.pipeline_mode<synchronous>, transform_indices = @transform_4, window_bounds = array<i64: 1, 1>}, {transform_indices = @transform_5, window_bounds = array<i64: 1, 32, 128>}]} {
    %c0 = arith.constant 0 : index
    %c0_0 = arith.constant 0 : index
    %c0_1 = arith.constant 0 : index
    %0 = vector.load %arg2[%c0, %c0_0, %c0_1] : memref<1x32x128xf32, #tpu.memory_space<vmem>>, vector<1x32x128xf32>
    %1 = vector.shape_cast %0 : vector<1x32x128xf32> to vector<32x128xf32>
    %c0_2 = arith.constant 0 : index
    %c0_3 = arith.constant 0 : index
    %2 = vector.load %arg3[%c0_2, %c0_3] : memref<4x32xf32, #tpu.memory_space<vmem>>, vector<4x32xf32>
    %cst = arith.constant dense<0.000000e+00> : vector<4x128xf32>
    %3 = tpu.matmul %2, %1, %cst {dimension_numbers = #tpu.dot_dimension_numbers<[1], [0], [0], [1], [0, 0, 1, 1], [], []>} : vector<4x32xf32>, vector<32x128xf32>, vector<4x128xf32> -> vector<4x128xf32>
    %c0_4 = arith.constant 0 : index
    %c0_5 = arith.constant 0 : index
    %4 = vector.load %arg4[%c0_4, %c0_5] : memref<4x1xf32, #tpu.memory_space<vmem>>, vector<4x1xf32>
    %5 = vector.broadcast %4 : vector<4x1xf32> to vector<4x128xf32>
    %6 = arith.addf %3, %5 : vector<4x128xf32>
    %cst_6 = arith.constant 0.000000e+00 : f32
    %7 = vector.broadcast %cst_6 : f32 to vector<4x128xf32>
    %8 = arith.maximumf %6, %7 : vector<4x128xf32>
    %c0_7 = arith.constant 0 : index
    %c0_8 = arith.constant 0 : index
    %9 = vector.load %arg5[%c0_7, %c0_8] : memref<1x4xf32, #tpu.memory_space<vmem>>, vector<1x4xf32>
    %cst_9 = arith.constant dense<0.000000e+00> : vector<1x128xf32>
    %10 = tpu.matmul %9, %8, %cst_9 {dimension_numbers = #tpu.dot_dimension_numbers<[1], [0], [0], [1], [0, 0, 1, 1], [], []>} : vector<1x4xf32>, vector<4x128xf32>, vector<1x128xf32> -> vector<1x128xf32>
    %c0_10 = arith.constant 0 : index
    %c0_11 = arith.constant 0 : index
    %11 = vector.load %arg6[%c0_10, %c0_11] : memref<1x1xf32, #tpu.memory_space<vmem>>, vector<1x1xf32>
    %12 = vector.broadcast %11 : vector<1x1xf32> to vector<1x128xf32>
    %13 = arith.addf %10, %12 : vector<1x128xf32>
    %14 = arith.negf %13 : vector<1x128xf32>
    %15 = math.exp %14 : vector<1x128xf32>
    %cst_12 = arith.constant 1.000000e+00 : f32
    %16 = vector.broadcast %cst_12 : f32 to vector<1x128xf32>
    %17 = arith.addf %16, %15 : vector<1x128xf32>
    %18 = arith.divf %16, %17 : vector<1x128xf32>
    %19 = vector.broadcast %18 : vector<1x128xf32> to vector<32x128xf32>
    %20 = arith.mulf %1, %19 : vector<32x128xf32>
    %c0_13 = arith.constant 0 : index
    %c0_14 = arith.constant 0 : index
    %c0_15 = arith.constant 0 : index
    %21 = vector.load %arg7[%c0_13, %c0_14, %c0_15] : memref<1x32x128xf32, #tpu.memory_space<vmem>>, vector<1x32x128xf32>
    %22 = vector.shape_cast %21 : vector<1x32x128xf32> to vector<32x128xf32>
    %23 = vector.shape_cast %20 : vector<32x128xf32> to vector<1x32x128xf32>
    tpu.vector_store %arg7[%c0_13, %c0_14, %c0_15], %23 {strides = array<i32>} : memref<1x32x128xf32, #tpu.memory_space<vmem>>, vector<1x32x128xf32>,
    return
  }
  func.func @transform_0(%arg0: i32, %arg1: i32) -> (i32, i32, i32) {
    %c0_i32 = arith.constant 0 : i32
    %c0_i32_0 = arith.constant 0 : i32
    return %arg0, %c0_i32, %arg1 : i32, i32, i32
  }
  func.func @transform_1(%arg0: i32, %arg1: i32) -> (i32, i32) {
    %c0_i32 = arith.constant 0 : i32
    %c0_i32_0 = arith.constant 0 : i32
    %c0_i32_1 = arith.constant 0 : i32
    return %c0_i32, %c0_i32_0 : i32, i32
  }
  func.func @transform_2(%arg0: i32, %arg1: i32) -> (i32, i32) {
    %c0_i32 = arith.constant 0 : i32
    %c0_i32_0 = arith.constant 0 : i32
    %c0_i32_1 = arith.constant 0 : i32
    return %c0_i32, %c0_i32_0 : i32, i32
  }
  func.func @transform_3(%arg0: i32, %arg1: i32) -> (i32, i32) {
    %c0_i32 = arith.constant 0 : i32
    %c0_i32_0 = arith.constant 0 : i32
    %c0_i32_1 = arith.constant 0 : i32
    return %c0_i32, %c0_i32_0 : i32, i32
  }
  func.func @transform_4(%arg0: i32, %arg1: i32) -> (i32, i32) {
    %c0_i32 = arith.constant 0 : i32
    %c0_i32_0 = arith.constant 0 : i32
    %c0_i32_1 = arith.constant 0 : i32
    return %c0_i32, %c0_i32_0 : i32, i32
  }
  func.func @transform_5(%arg0: i32, %arg1: i32) -> (i32, i32, i32) {
    %c0_i32 = arith.constant 0 : i32
    %c0_i32_0 = arith.constant 0 : i32
    return %arg0, %c0_i32, %arg1 : i32, i32, i32
  }
}

</mosaic_0001>

<bundles_post_ra>
// kernel: _lambda_.1
= control target key start
LH: loop header
LB: loop body
LE: loop exit
PB: predicated region body
PF: predicated region fallthrough
CT: control target
= control target key end

     0   :  { %s920_s0 = inlined_call_operand.vmem [shape: f32[2,32,256], index: 0, kind: input, shape index: {}]   ;;  %s921_s1 = inlined_call_operand.vmem [shape: f32[4,32], index: 1, kind: input, shape index: {}]   ;;  %s922_s2 = inlined_call_operand.vmem [shape: f32[4,1], index: 2, kind: input, shape index: {}]   ;;  %s923_s3 = inlined_call_operand.vmem [shape: f32[1,4], index: 3, kind: input, shape index: {}]   ;;  %s924_s4 = inlined_call_operand.<no memory space> [shape: f32[1,1], index: 4, kind: input, shape index: {}]   ;;  %s925_s5 = inlined_call_operand.vmem [shape: f32[2,32,256], index: 5, kind: output, shape index: {}]  }
   0x1   :  { %v10_v0 = vstv %s924_s4 }
   0x2   :  { %11 = vst [vmem:[#allocation2] sm:$0x1] %v10_v0 }
   0x3   :  { %s811_s20 = smov 0   ;;  %s813_s21 = smov 0  }
   0x4   :  { %s815_s22 = smov 0   ;;  %s817_s23 = smov 0  }
   0x5   :  { %s819_s24 = smov 0   ;;  %s821_s25 = smov 0  }
   0x6   :  { %s823_s26 = smov 0  }
   0x7 LB: > { %s26_s4 = sadd.s32 1, %s764_s24  ;;  %s29_s27 = sadd.s32 1, %s768_s25  ;;  %s772_s26 = sphi %s823_s26, %s17_s26   ;;  %s768_s25 = sphi %s821_s25, %s932_s25   ;;  %s764_s24 = sphi %s819_s24, %s931_s24   ;;  %s760_s23 = sphi %s817_s23, %s930_s23   ;;  %s756_s22 = sphi %s815_s22, %s929_s22   ;;  %s752_s21 = sphi %s813_s21, %s928_s21   ;;  %s748_s20 = sphi %s811_s20, %s927_s20  }
   0x8   : > { %p27_p0 = scmp.ge.s32.totalorder %s26_s4, 2  ;;  %s605_s28 = sadd.s32 4294967295, %s772_s26  }
   0x9   : > { %p45_p1 = scmp.ne.s32.totalorder %s752_s21, %s748_s20  ;;  %p46_p2 = scmp.eq.s32.totalorder %s772_s26, 0 }
   0xa   : > { %s934_s4 = smov (%p27_p0, %s26_s4), 0  ;;  %s936_s27 = smov (!%p27_p0, %s29_s27), %s768_s25 }
   0xb   : > { %p31_p3 = scmp.ge.s32.totalorder %s936_s27, 2  ;;  %p161_p4 = scmp.eq.s32.totalorder %s605_s28, 3 }
   0xc   : > { %s34_s29 = ssub.s32 %s764_s24, %s934_s4  ;;  %p47_p5 = por %p46_p2, %p45_p1 }
   0xd   : > { %s938_s27 = smov (%p31_p3, %s936_s27), 0  ;;  %p859_p6 = por %p161_p4, %p45_p1 }
   0xe   : > { %s33_s6 = ssub.s32 %s768_s25, %s938_s27  ;;  %s38_s8 = sadd.s32 1, %s752_s21 }
   0xf   : > { %s35_s7 = sor.u32 %s34_s29, %s33_s6  ;;  %p608_p8 = scmp.ge.s32.totalorder %s772_s26, 4 }
  0x10   : > { %p36_p7 = scmp.eq.s32.totalorder %s35_s7, 0 }
  0x11   : > { %195 = sbr.rel (%p608_p8) target bundleno = 32 (0x20), region = 32 }
  0x12   : > { %s867_s9 = scalar_select %p36_p7, %s752_s21, %s38_s8  }
  0x18   : > { %198 = sbr.rel (!%p47_p5) target bundleno = 32 (0x20), region = 36  ;;  %s200_s10 = sand.u32 (%p47_p5), 1, %s752_s21  }
  0x19   : > { %s610_s11 = sshll.u32 (%p47_p5), %s768_s25, 3  ;;  %s609_s12 = sshll.u32 (%p47_p5), %s200_s10, 5 }
  0x1a   : > { %s204_s13 = sadd.s32 (%p47_p5), %s764_s24, %s610_s11  ;;  %s202_s18 = scalar_lea.vmem (%p47_p5), [#allocation3], %s609_s12 }
  0x1b   : > { %s611_s14 = sshll.u32 (%p47_p5), %s204_s13, 3 }
  0x1c   : > { %s206_s17 = scalar_lea.vmem (%p47_p5), %s920_s0, %s611_s14 }
  0x1d   : > { %v240_v1 = vld [vmem:[%s206_s17] sm:$0xff] (%p47_p5)  ;;  %v242_v2 = vld [vmem:[%s206_s17 + $0x10] sm:$0xff] (%p47_p5) }
  0x1e   : > { %v244_v3 = vld [vmem:[%s206_s17 + $0x20] sm:$0xff] (%p47_p5)  ;;  %241 = vst [vmem:[%s202_s18] sm:$0xff] (%p47_p5), %v240_v1  ;;  %243 = vst [vmem:[%s202_s18 + $0x8] sm:$0xff] (%p47_p5), %v242_v2  ;;  %v246_v4 = vld [vmem:[%s206_s17 + $0x30] sm:$0xff] (%p47_p5) }
  0x1f   : > { %245 = vst [vmem:[%s202_s18 + $0x10] sm:$0xff] %v244_v3  ;;  %247 = vst [vmem:[%s202_s18 + $0x18] sm:$0xff] %v246_v4 }
  0x20 PF: > { %p612_p9 = scmp.ge.s32.totalorder %s772_s26, 1  ;;  %p252_p10 = scmp.lt.s32.totalorder %s772_s26, 5 }
  0x22   : > { %p253_p11 = pnand %p612_p9, %p252_p10 }
  0x23   : > { %s259_s19 = sand.u32 (!%p253_p11), 1, %s748_s20   ;;  %v774_v5 = vmov (!%p253_p11), 0.0|0.0   ;;  %vm775_vm0 = vmmov (!%p253_p11), 0   ;;  %v776_v6 = vmov (!%p253_p11), 0.0   ;;  %v290_v7 = vld [vmem:[%s922_s2] sm:$0xf] (!%p253_p11)  ;;  %v378_v23 = vlaneseq (!%p253_p11) }
  0x24   : > { %256 = sbr.rel (%p253_p11) target bundleno = 519 (0x207), region = 74  ;;  %647 = vmatprep.subr.bf16.mxu0 (!%p253_p11), %v774_v5  ;;  %s879_s28 = sshll.u32 (!%p253_p11), %s259_s19, 5  ;;  %639 = vmatprep.mubr.msk.f32.mxu0 (!%p253_p11), %vm775_vm0, %v776_v6  ;;  %v777_v8 = vmov (!%p253_p11), 0   ;;  %v372_v14 = vld [vmem:[#allocation2] sm:$0x1] (!%p253_p11)  ;;  %vm296_vm1 = vcmask (!%p253_p11), 261120  }
  0x25   : > { %713 = vset.pattern.permute.xlu0 (!%p253_p11), %v777_v8  ;;  %642 = vmatprep.subr.mxu1 (!%p253_p11), %v776_v6  ;;  %s261_s7 = scalar_lea.vmem (!%p253_p11), [#allocation3], %s879_s28  ;;  %v289_v16 = vld [vmem:[%s921_s1] sm:$0xf] (!%p253_p11)  ;;  %vm386_vm2 = vcmask (!%p253_p11), 1043456   ;;  %vm382_vm3 = vcmask (!%p253_p11), 31744   ;;  %v379_v24 = vshrl.u32 (!%p253_p11), %v378_v23, 7 }
  0x26   : > { %v285_v9 = vld [vmem:[%s261_s7] sm:$0xff] (!%p253_p11)  ;;  %v286_v10 = vld [vmem:[%s261_s7 + $0x8] sm:$0xff] (!%p253_p11)  ;;  %v287_v11 = vld [vmem:[%s261_s7 + $0x10] sm:$0xff] (!%p253_p11)  ;;  %293 = vperm.xlu0 (!%p253_p11), %713, %v290_v7   ;;  %644 = vmatprep.mubr.msk.f32.mxu1 (!%p253_p11), %vm775_vm0, %v776_v6  ;;  %s284_s12 = scalar_lea.vmem (!%p253_p11), [#allocation4], %s879_s28 }
  0x27   : > { %v648_v12 = vpack.c.bf16 (!%p253_p11), %v286_v10, %v285_v9  ;;  %v288_v13 = vld [vmem:[%s261_s7 + $0x18] sm:$0xff] (!%p253_p11)  ;;  %v380_v25 = vsub.s32 (!%p253_p11), 0, %v379_v24 }
  0x28   : > { %v651_v15 = vpack.c.bf16 (!%p253_p11), %v288_v13, %v287_v11  ;;  %v371_v22 = vld [vmem:[%s923_s3] sm:$0x1] (!%p253_p11) }
  0x29   : > { %649 = vmatpush3.bf16.msra.mxu0 (!%p253_p11), %v648_v12 }
  0x2a   : > { %650 = vmatprep.subr.bf16.mxu0 (!%p253_p11), %v774_v5  ;;  %375 = vperm.xlu0 (!%p253_p11), %713, %v372_v14  }
  0x2b   : > { %s620_s13 = sshll.u32 (%p859_p6), %s760_s23, 3 }
  0x2c   : > { %s486_s14 = sadd.s32 (%p859_p6), %s756_s22, %s620_s13 }
  0x2d   : > { %652 = vmatpush3.bf16.msra.mxu0 %v651_v15  ;;  %s621_s15 = sshll.u32 (%p859_p6), %s486_s14, 3 }
  0x2e   : > { %s488_s18 = scalar_lea.vmem (%p859_p6), %s925_s5, %s621_s15 }
  0x30   : > { %640 = vmatmul.mubr.msk.f32.vlgmr.msra.gmra.mrb[0].mxu0 %vm296_vm1, %v289_v16 }
  0xa5   : > { %v294_v17 = vpop.permute.xlu0 %293 }
  0xa9   : > { %v376_v26 = vpop.permute.xlu0 %375 }
  0xaa   : > { %v381_v27 = vrot.slane %v376_v26, %v380_v25 }
 0x103   : > { %v366_v18 = vpop.f32.mrb[0].mxu0 }
 0x104   : > { %v367_v19 = vadd.f32 %v366_v18, %v294_v17  ;;  %v641_v20 = vpop.f32.mrb[1].mxu0 }
 0x106   : > { %v370_v21 = vmax.f32 %v367_v19, 0.0 }
 0x108   : > { %643 = vmatpush3.msk.msra.mxu1 %vm386_vm2, %v370_v21 }
 0x109   : > { %645 = vmatmul.mubr.msk.f32.vlgmr.msra.gmra.mrb[0].mxu1 %vm382_vm3, %v371_v22 }
 0x1dc   : > { %v456_v28 = vpop.f32.mrb[0].mxu1 }
 0x1dd   : > { %v457_v29 = vadd.f32 %v456_v28, %v381_v27  ;;  %v646_v30 = vpop.f32.mrb[1].mxu1 }
 0x1df   : > { %v618_v31 = vmul.f32 -1.442695, %v457_v29 }
 0x1e1   : > { %714 = vpow2.f32 %v618_v31 }
 0x1eb   : > { %v715_v32 = vpop.eup %714 }
 0x1ec   : > { %v463_v33 = vadd.f32 1.0, %v715_v32 }
 0x1ee   : > { %716 = vrcp.f32 %v463_v33 }
 0x1f8   : > { %v717_v34 = vpop.eup %716  ;;  %484 = sbr.rel (!%p859_p6) target bundleno = 519 (0x207), region = 82 }
 0x1f9   : > { %v469_v35 = vrot.slane %v717_v34, %v380_v25 }
 0x1fb   : > { %v470_v36 = vmul.f32 %v469_v35, %v285_v9  ;;  %v471_v37 = vmul.f32 %v469_v35, %v286_v10  ;;  %v472_v38 = vmul.f32 %v469_v35, %v287_v11  ;;  %v473_v39 = vmul.f32 %v469_v35, %v288_v13 }
 0x1fd   : > { %474 = vst [vmem:[%s284_s12] sm:$0xff] %v470_v36  ;;  %475 = vst [vmem:[%s284_s12 + $0x8] sm:$0xff] %v471_v37 }
 0x1fe   : > { %476 = vst [vmem:[%s284_s12 + $0x10] sm:$0xff] %v472_v38  ;;  %477 = vst [vmem:[%s284_s12 + $0x18] sm:$0xff] %v473_v39 }
 0x204   : > { %v522_v40 = vld [vmem:[%s284_s12] sm:$0xff]  ;;  %v524_v41 = vld [vmem:[%s284_s12 + $0x8] sm:$0xff] }
 0x205   : > { %v526_v42 = vld [vmem:[%s284_s12 + $0x10] sm:$0xff]  ;;  %v528_v43 = vld [vmem:[%s284_s12 + $0x18] sm:$0xff]  ;;  %523 = vst [vmem:[%s488_s18] sm:$0xff] %v522_v40  ;;  %525 = vst [vmem:[%s488_s18 + $0x10] sm:$0xff] %v524_v41 }
 0x206   : > { %527 = vst [vmem:[%s488_s18 + $0x20] sm:$0xff] %v526_v42  ;;  %529 = vst [vmem:[%s488_s18 + $0x30] sm:$0xff] %v528_v43 }
 0x207 PF: > { %s17_s26 = sadd.s32 1, %s772_s26   ;;  %s927_s20 = smov %s752_s21 }
 0x208   : > { %p14_p12 = scmp.ge.s32.totalorder %s17_s26, 6   ;;  %s928_s21 = smov %s867_s9 }
 0x209   : > { %s929_s22 = smov %s764_s24  ;;  %s930_s23 = smov %s768_s25 }
 0x20a   : > { %s931_s24 = smov %s934_s4  ;;  %s932_s25 = smov %s938_s27 }
 0x20b   :  { %16 = sbr.rel (!%p14_p12) target bundleno = 7 (0x7), region = 151 }

</bundles_post_ra>
